<compile_context>
chip_gen: v5e
topology: v5e:2x2
jax: 0.10.0
libtpu: 0.0.40
codegen_flags: <defaults>
</compile_context>

<pallas_src>
from functools import partial

import jax
import jax.numpy as jnp
from jax.experimental import pallas as pl
from jax.experimental.pallas import tpu as pltpu


def nn_shallow_kernel(xt_ref,
                      w1_ref, b1_ref,
                      w2_ref, b2_ref,
                      w3_ref, b3_ref,
                      w4_ref, b4_ref,
                      ot_ref):
    """Fused transposed forward: out^T = abs(W4 @ relu(W3 @ relu(W2 @ relu(W1 @ x^T))))."""
    bf16 = jnp.bfloat16
    h = xt_ref[...]                                                     # [in, tile_b] bf16

    h = jnp.dot(w1_ref[...], h, preferred_element_type=jnp.float32) + b1_ref[...]
    h = jnp.maximum(h, 0.0).astype(bf16)                                # activation1 = ReLU

    h = jnp.dot(w2_ref[...], h, preferred_element_type=jnp.float32) + b2_ref[...]
    h = jnp.maximum(h, 0.0).astype(bf16)                                # activation2 = ReLU

    h = jnp.dot(w3_ref[...], h, preferred_element_type=jnp.float32) + b3_ref[...]
    h = jnp.maximum(h, 0.0).astype(bf16)                                # activation3 = ReLU

    h = jnp.dot(w4_ref[...], h, preferred_element_type=jnp.float32) + b4_ref[...]
    ot_ref[...] = jnp.abs(h).astype(ot_ref.dtype)                       # abs(out)


@partial(jax.jit, static_argnames=("tile_b",))
def nn_shallow_forward(x, params, *, tile_b=None):
    """x: [B, input_size] f32.  params: bf16 weights [out, in], f32 biases [out, 1]."""
    B, in_features = x.shape
    out_features = params["w4"].shape[0]

    if tile_b is None:
        # Lane-aligned batch tile: 128 keeps the grid multi-step (v7x megacore)
        # at moderate batch; 512 amortizes per-step overhead at large batch.
        tile_b = 128 if B <= 1024 else 512
    assert tile_b % 128 == 0, "batch tile must be lane-aligned (multiple of 128)"

    grid_b = pl.cdiv(B, tile_b)
    padded_b = grid_b * tile_b

    # Batch onto the lane axis, in bf16 (the kernel consumes bf16 operands);
    # padded batch columns are independent garbage discarded after the call.
    xt = x.T.astype(jnp.bfloat16)                                       # [in, B]
    if padded_b != B:
        xt = jnp.pad(xt, ((0, 0), (0, padded_b - B)))

    def full_spec(arr):
        # Full-resident operand (block shape == full array dims, constant index map).
        return pl.BlockSpec(arr.shape, lambda i: (0,) * arr.ndim)

    in_specs = [
        pl.BlockSpec((in_features, tile_b), lambda i: (0, i)),
        full_spec(params["w1"]), full_spec(params["b1"]),
        full_spec(params["w2"]), full_spec(params["b2"]),
        full_spec(params["w3"]), full_spec(params["b3"]),
        full_spec(params["w4"]), full_spec(params["b4"]),
    ]
    out_spec = pl.BlockSpec((out_features, tile_b), lambda i: (0, i))

    # Scoped-VMEM budget from the actual block footprint (defaults are 16/32 MiB,
    # well below physical); 4x headroom, capped at v7x's 64 MiB physical VMEM.
    io_bytes = 2 * tile_b * (2 * in_features + 4 * out_features)        # double-buffered x^T / out^T
    param_bytes = 2 * sum(int(v.size) * v.dtype.itemsize for v in params.values())
    vmem_limit = int(min(64 << 20, max(4 * (io_bytes + param_bytes), 16 << 20)))

    out_t = pl.pallas_call(
        nn_shallow_kernel,
        out_shape=jax.ShapeDtypeStruct((out_features, padded_b), jnp.float32),
        grid_spec=pltpu.PrefetchScalarGridSpec(
            num_scalar_prefetch=0,
            grid=(grid_b,),
            in_specs=in_specs,
            out_specs=out_spec,
        ),
        compiler_params=pltpu.CompilerParams(
            dimension_semantics=("parallel",),
            vmem_limit_bytes=vmem_limit,
        ),
    )(xt, params["w1"], params["b1"], params["w2"], params["b2"],
      params["w3"], params["b3"], params["w4"], params["b4"])

    # Back to [B, out_features]; layout plumbing stays outside the kernel and
    # fuses under the surrounding jit.
    return out_t.T[:B]


def init_params(key, input_size, hidden_size, output_size):
    """nn.Linear-style init (uniform +-1/sqrt(fan_in)).

    Weights kept in PyTorch [out_features, in_features] layout but stored in
    bf16 (halves HBM->VMEM traffic, native MXU operand dtype); biases stay f32
    as [out_features, 1] columns so they lane-broadcast inside the kernel."""
    def linear(key, fan_in, fan_out):
        kw, kb = jax.random.split(key)
        bound = 1.0 / jnp.sqrt(fan_in)
        w = jax.random.uniform(kw, (fan_out, fan_in), jnp.float32, -bound, bound)
        b = jax.random.uniform(kb, (fan_out, 1), jnp.float32, -bound, bound)
        return w.astype(jnp.bfloat16), b

    k1, k2, k3, k4 = jax.random.split(key, 4)
    w1, b1 = linear(k1, input_size, hidden_size)
    w2, b2 = linear(k2, hidden_size, hidden_size)
    w3, b3 = linear(k3, hidden_size, hidden_size)
    w4, b4 = linear(k4, hidden_size, output_size)
    return dict(w1=w1, b1=b1, w2=w2, b2=b2, w3=w3, b3=b3, w4=w4, b4=b4)


def reference_forward_f32(x, p):
    """Pure-f32 reference matching the original PyTorch module semantics."""
    def lin(h, w, b):
        return h @ w.astype(jnp.float32).T + b[:, 0]
    h = jnp.maximum(lin(x, p["w1"], p["b1"]), 0.0)
    h = jnp.maximum(lin(h, p["w2"], p["b2"]), 0.0)
    h = jnp.maximum(lin(h, p["w3"], p["b3"]), 0.0)
    return jnp.abs(lin(h, p["w4"], p["b4"]))


def reference_forward_bf16(x, p):
    """Reference mimicking the kernel's bf16-operand / f32-accumulate dots."""
    bf16 = jnp.bfloat16
    def lin(h, w, b):
        return jnp.dot(h.astype(bf16), w.T, preferred_element_type=jnp.float32) + b[:, 0]
    h = jnp.maximum(lin(x, p["w1"], p["b1"]), 0.0)
    h = jnp.maximum(lin(h, p["w2"], p["b2"]), 0.0)
    h = jnp.maximum(lin(h, p["w3"], p["b3"]), 0.0)
    return jnp.abs(lin(h, p["w4"], p["b4"]))


if __name__ == "__main__":
    key = jax.random.PRNGKey(0)
    kx, kp = jax.random.split(key)

    batch = 256           # -> two 128-wide lane-aligned tiles (parallel grid of 2)
    input_size = 16
    hidden_size = 32
    output_size = 8

    x = jax.random.normal(kx, (batch, input_size), jnp.float32)
    params = init_params(kp, input_size, hidden_size, output_size)

    out = jax.block_until_ready(nn_shallow_forward(x, params))
    assert out.shape == (batch, output_size)
    assert out.dtype == jnp.float32

    ref_bf16 = reference_forward_bf16(x, params)   # same bf16/f32 mixed precision as the kernel
    ref_f32 = reference_forward_f32(x, params)     # original f32 module semantics
    assert jnp.allclose(out, ref_bf16, atol=1e-3, rtol=1e-3), "mismatch vs bf16 reference"
    assert jnp.allclose(out, ref_f32, atol=5e-2, rtol=5e-2), "mismatch vs f32 reference"

    # non-multiple-of-128 batch exercises the padding/slicing path
    out_small = jax.block_until_ready(nn_shallow_forward(x[:50], params))
    assert out_small.shape == (50, output_size)
    assert jnp.allclose(out_small, ref_bf16[:50], atol=1e-3, rtol=1e-3), "mismatch on padded batch"

    print("KERNEL_OK")
</pallas_src>

<mosaic_0001>
module attributes {stable_mosaic.version = 11 : i64} {
  func.func @nn_shallow_kernel(%arg0: i32, %arg1: memref<16x128xbf16, #tpu.memory_space<vmem>>, %arg2: memref<32x16xbf16, #tpu.memory_space<vmem>>, %arg3: memref<32x1xf32, #tpu.memory_space<vmem>>, %arg4: memref<32x32xbf16, #tpu.memory_space<vmem>>, %arg5: memref<32x1xf32, #tpu.memory_space<vmem>>, %arg6: memref<32x32xbf16, #tpu.memory_space<vmem>>, %arg7: memref<32x1xf32, #tpu.memory_space<vmem>>, %arg8: memref<8x32xbf16, #tpu.memory_space<vmem>>, %arg9: memref<8x1xf32, #tpu.memory_space<vmem>>, %arg10: memref<8x128xf32, #tpu.memory_space<vmem>>) attributes {dimension_semantics = [#tpu.dimension_semantics<parallel>], iteration_bounds = array<i64: 2>, scalar_prefetch = 0 : i64, scratch_operands = 0 : i64, tpu.core_type = #tpu.core_type<tc>, window_params = [{transform_indices = @transform_0, window_bounds = array<i64: 16, 128>}, {pipeline_mode = #tpu.pipeline_mode<synchronous>, transform_indices = @transform_1, window_bounds = array<i64: 32, 16>}, {pipeline_mode = #tpu.pipeline_mode<synchronous>, transform_indices = @transform_2, window_bounds = array<i64: 32, 1>}, {pipeline_mode = #tpu.pipeline_mode<synchronous>, transform_indices = @transform_3, window_bounds = array<i64: 32, 32>}, {pipeline_mode = #tpu.pipeline_mode<synchronous>, transform_indices = @transform_4, window_bounds = array<i64: 32, 1>}, {pipeline_mode = #tpu.pipeline_mode<synchronous>, transform_indices = @transform_5, window_bounds = array<i64: 32, 32>}, {pipeline_mode = #tpu.pipeline_mode<synchronous>, transform_indices = @transform_6, window_bounds = array<i64: 32, 1>}, {pipeline_mode = #tpu.pipeline_mode<synchronous>, transform_indices = @transform_7, window_bounds = array<i64: 8, 32>}, {pipeline_mode = #tpu.pipeline_mode<synchronous>, transform_indices = @transform_8, window_bounds = array<i64: 8, 1>}, {transform_indices = @transform_9, window_bounds = array<i64: 8, 128>}]} {
    %c0 = arith.constant 0 : index
    %c0_0 = arith.constant 0 : index
    %0 = vector.load %arg1[%c0, %c0_0] : memref<16x128xbf16, #tpu.memory_space<vmem>>, vector<16x128xbf16>
    %c0_1 = arith.constant 0 : index
    %c0_2 = arith.constant 0 : index
    %1 = vector.load %arg2[%c0_1, %c0_2] : memref<32x16xbf16, #tpu.memory_space<vmem>>, vector<32x16xbf16>
    %cst = arith.constant dense<0.000000e+00> : vector<32x128xf32>
    %2 = tpu.matmul %1, %0, %cst {dimension_numbers = #tpu.dot_dimension_numbers<[1], [0], [0], [1], [0, 0, 1, 1], [], []>} : vector<32x16xbf16>, vector<16x128xbf16>, vector<32x128xf32> -> vector<32x128xf32>
    %c0_3 = arith.constant 0 : index
    %c0_4 = arith.constant 0 : index
    %3 = vector.load %arg3[%c0_3, %c0_4] : memref<32x1xf32, #tpu.memory_space<vmem>>, vector<32x1xf32>
    %4 = vector.broadcast %3 : vector<32x1xf32> to vector<32x128xf32>
    %5 = arith.addf %2, %4 : vector<32x128xf32>
    %cst_5 = arith.constant 0.000000e+00 : f32
    %6 = vector.broadcast %cst_5 : f32 to vector<32x128xf32>
    %7 = arith.maximumf %5, %6 : vector<32x128xf32>
    %8 = arith.truncf %7 : vector<32x128xf32> to vector<32x128xbf16>
    %c0_6 = arith.constant 0 : index
    %c0_7 = arith.constant 0 : index
    %9 = vector.load %arg4[%c0_6, %c0_7] : memref<32x32xbf16, #tpu.memory_space<vmem>>, vector<32x32xbf16>
    %cst_8 = arith.constant dense<0.000000e+00> : vector<32x128xf32>
    %10 = tpu.matmul %9, %8, %cst_8 {dimension_numbers = #tpu.dot_dimension_numbers<[1], [0], [0], [1], [0, 0, 1, 1], [], []>} : vector<32x32xbf16>, vector<32x128xbf16>, vector<32x128xf32> -> vector<32x128xf32>
    %c0_9 = arith.constant 0 : index
    %c0_10 = arith.constant 0 : index
    %11 = vector.load %arg5[%c0_9, %c0_10] : memref<32x1xf32, #tpu.memory_space<vmem>>, vector<32x1xf32>
    %12 = vector.broadcast %11 : vector<32x1xf32> to vector<32x128xf32>
    %13 = arith.addf %10, %12 : vector<32x128xf32>
    %cst_11 = arith.constant 0.000000e+00 : f32
    %14 = vector.broadcast %cst_11 : f32 to vector<32x128xf32>
    %15 = arith.maximumf %13, %14 : vector<32x128xf32>
    %16 = arith.truncf %15 : vector<32x128xf32> to vector<32x128xbf16>
    %c0_12 = arith.constant 0 : index
    %c0_13 = arith.constant 0 : index
    %17 = vector.load %arg6[%c0_12, %c0_13] : memref<32x32xbf16, #tpu.memory_space<vmem>>, vector<32x32xbf16>
    %cst_14 = arith.constant dense<0.000000e+00> : vector<32x128xf32>
    %18 = tpu.matmul %17, %16, %cst_14 {dimension_numbers = #tpu.dot_dimension_numbers<[1], [0], [0], [1], [0, 0, 1, 1], [], []>} : vector<32x32xbf16>, vector<32x128xbf16>, vector<32x128xf32> -> vector<32x128xf32>
    %c0_15 = arith.constant 0 : index
    %c0_16 = arith.constant 0 : index
    %19 = vector.load %arg7[%c0_15, %c0_16] : memref<32x1xf32, #tpu.memory_space<vmem>>, vector<32x1xf32>
    %20 = vector.broadcast %19 : vector<32x1xf32> to vector<32x128xf32>
    %21 = arith.addf %18, %20 : vector<32x128xf32>
    %cst_17 = arith.constant 0.000000e+00 : f32
    %22 = vector.broadcast %cst_17 : f32 to vector<32x128xf32>
    %23 = arith.maximumf %21, %22 : vector<32x128xf32>
    %24 = arith.truncf %23 : vector<32x128xf32> to vector<32x128xbf16>
    %c0_18 = arith.constant 0 : index
    %c0_19 = arith.constant 0 : index
    %25 = vector.load %arg8[%c0_18, %c0_19] : memref<8x32xbf16, #tpu.memory_space<vmem>>, vector<8x32xbf16>
    %cst_20 = arith.constant dense<0.000000e+00> : vector<8x128xf32>
    %26 = tpu.matmul %25, %24, %cst_20 {dimension_numbers = #tpu.dot_dimension_numbers<[1], [0], [0], [1], [0, 0, 1, 1], [], []>} : vector<8x32xbf16>, vector<32x128xbf16>, vector<8x128xf32> -> vector<8x128xf32>
    %c0_21 = arith.constant 0 : index
    %c0_22 = arith.constant 0 : index
    %27 = vector.load %arg9[%c0_21, %c0_22] : memref<8x1xf32, #tpu.memory_space<vmem>>, vector<8x1xf32>
    %28 = vector.broadcast %27 : vector<8x1xf32> to vector<8x128xf32>
    %29 = arith.addf %26, %28 : vector<8x128xf32>
    %30 = math.absf %29 : vector<8x128xf32>
    %c0_23 = arith.constant 0 : index
    %c0_24 = arith.constant 0 : index
    %31 = vector.load %arg10[%c0_23, %c0_24] : memref<8x128xf32, #tpu.memory_space<vmem>>, vector<8x128xf32>
    tpu.vector_store %arg10[%c0_23, %c0_24], %30 {strides = array<i32>} : memref<8x128xf32, #tpu.memory_space<vmem>>, vector<8x128xf32>,
    return
  }
  func.func @transform_0(%arg0: i32) -> (i32, i32) {
    %c0_i32 = arith.constant 0 : i32
    %c0_i32_0 = arith.constant 0 : i32
    return %c0_i32, %arg0 : i32, i32
  }
  func.func @transform_1(%arg0: i32) -> (i32, i32) {
    %c0_i32 = arith.constant 0 : i32
    %c0_i32_0 = arith.constant 0 : i32
    %c0_i32_1 = arith.constant 0 : i32
    return %c0_i32, %c0_i32_0 : i32, i32
  }
  func.func @transform_2(%arg0: i32) -> (i32, i32) {
    %c0_i32 = arith.constant 0 : i32
    %c0_i32_0 = arith.constant 0 : i32
    %c0_i32_1 = arith.constant 0 : i32
    return %c0_i32, %c0_i32_0 : i32, i32
  }
  func.func @transform_3(%arg0: i32) -> (i32, i32) {
    %c0_i32 = arith.constant 0 : i32
    %c0_i32_0 = arith.constant 0 : i32
    %c0_i32_1 = arith.constant 0 : i32
    return %c0_i32, %c0_i32_0 : i32, i32
  }
  func.func @transform_4(%arg0: i32) -> (i32, i32) {
    %c0_i32 = arith.constant 0 : i32
    %c0_i32_0 = arith.constant 0 : i32
    %c0_i32_1 = arith.constant 0 : i32
    return %c0_i32, %c0_i32_0 : i32, i32
  }
  func.func @transform_5(%arg0: i32) -> (i32, i32) {
    %c0_i32 = arith.constant 0 : i32
    %c0_i32_0 = arith.constant 0 : i32
    %c0_i32_1 = arith.constant 0 : i32
    return %c0_i32, %c0_i32_0 : i32, i32
  }
  func.func @transform_6(%arg0: i32) -> (i32, i32) {
    %c0_i32 = arith.constant 0 : i32
    %c0_i32_0 = arith.constant 0 : i32
    %c0_i32_1 = arith.constant 0 : i32
    return %c0_i32, %c0_i32_0 : i32, i32
  }
  func.func @transform_7(%arg0: i32) -> (i32, i32) {
    %c0_i32 = arith.constant 0 : i32
    %c0_i32_0 = arith.constant 0 : i32
    %c0_i32_1 = arith.constant 0 : i32
    return %c0_i32, %c0_i32_0 : i32, i32
  }
  func.func @transform_8(%arg0: i32) -> (i32, i32) {
    %c0_i32 = arith.constant 0 : i32
    %c0_i32_0 = arith.constant 0 : i32
    %c0_i32_1 = arith.constant 0 : i32
    return %c0_i32, %c0_i32_0 : i32, i32
  }
  func.func @transform_9(%arg0: i32) -> (i32, i32) {
    %c0_i32 = arith.constant 0 : i32
    %c0_i32_0 = arith.constant 0 : i32
    return %c0_i32, %arg0 : i32, i32
  }
}

</mosaic_0001>

<bundles_post_ra>
// kernel: nn_shallow_forward.1
= control target key start
LH: loop header
LB: loop body
LE: loop exit
PB: predicated region body
PF: predicated region fallthrough
CT: control target
= control target key end

     0   :  { %14 = vsyncpa [#allocation4], 0  ;;  %s1077_s0 = inlined_call_operand.vmem [shape: bf16[16,256], index: 0, kind: input, shape index: {}]   ;;  %s1078_s1 = inlined_call_operand.vmem [shape: bf16[32,16], index: 1, kind: input, shape index: {}]   ;;  %s1079_s2 = inlined_call_operand.vmem [shape: f32[32,1], index: 2, kind: input, shape index: {}]   ;;  %s1080_s3 = inlined_call_operand.vmem [shape: bf16[32,32], index: 3, kind: input, shape index: {}]   ;;  %s1081_s4 = inlined_call_operand.vmem [shape: f32[32,1], index: 4, kind: input, shape index: {}]   ;;  %s1082_s5 = inlined_call_operand.vmem [shape: bf16[32,32], index: 5, kind: input, shape index: {}]   ;;  %s1083_s6 = inlined_call_operand.vmem [shape: f32[32,1], index: 6, kind: input, shape index: {}]   ;;  %s1084_s7 = inlined_call_operand.vmem [shape: bf16[8,32], index: 7, kind: input, shape index: {}]   ;;  %s1085_s8 = inlined_call_operand.vmem [shape: f32[8,1], index: 8, kind: input, shape index: {}]   ;;  %s1086_s9 = inlined_call_operand.hbm [shape: f32[8,256], index: 9, kind: output, shape index: {}]  }
   0x1   :  { %16 = vsyncpa [#allocation4 + $0x1], 0  ;;  %s914_s30 = smov 0   ;;  %s916_s10 = smov 0  }
   0x2   :  { %s918_s11 = smov 0   ;;  %s920_s12 = smov 0  }
   0x3 LB: > { %s701_s13 = sadd.s32 4294967295, %s861_s12   ;;  %s702_s14 = sadd.s32 4294967294, %s861_s12   ;;  %s861_s12 = sphi %s920_s12, %s1092_s12   ;;  %s857_s11 = sphi %s918_s11, %s1091_s11   ;;  %s853_s10 = sphi %s916_s10, %s1090_s10   ;;  %s849_s30 = sphi %s914_s30, %s1089_s30  }
   0x4   : > { %s937_s15 = sadd.s32 1, %s861_s12   ;;  %s29_s16 = sadd.s32 1, %s857_s11 }
   0x5   : > { %s26_s17 = ssub.s32 %s861_s12, %s937_s15  ;;  %p36_p0 = scmp.ne.s32.totalorder %s857_s11, %s853_s10 }
   0x6   : > { %p27_p1 = scmp.eq.s32.totalorder %s26_s17, 0  ;;  %p37_p2 = scmp.eq.s32.totalorder %s861_s12, 0 }
   0x7   : > { %p234_p3 = scmp.eq.s32.totalorder %s701_s13, 1  ;;  %p239_p4 = scmp.ne.s32.totalorder %s853_s10, %s849_s30 }
   0x8   : > { %s950_s18 = scalar_select %p27_p1, %s857_s11, %s29_s16  }
   0x9   : > { %p38_p5 = por %p37_p2, %p36_p0  ;;  %p952_p6 = por %p234_p3, %p36_p0 }
   0xa   : > { %p240_p7 = scmp.eq.s32.totalorder %s702_s14, 1  ;;  %p704_p9 = scmp.ge.s32.totalorder %s861_s12, 2 }
   0xc   : > { %p956_p8 = por %p240_p7, %p239_p4  ;;  %280 = sbr.rel (%p704_p9) target bundleno = 23 (0x17), region = 48 }
  0x11   : > { %283 = sbr.rel (!%p38_p5) target bundleno = 23 (0x17), region = 52  ;;  %s285_s21 = sand.u32 (%p38_p5), 1, %s857_s11  }
  0x12   : > { %s706_s22 = sshll.u32 (%p38_p5), %s861_s12, 2  ;;  %s705_s23 = sshll.u32 (%p38_p5), %s285_s21, 3 }
  0x13   : > { %s289_s26 = scalar_lea.vmem (%p38_p5), %s1077_s0, %s706_s22  ;;  %s287_s27 = scalar_lea.vmem (%p38_p5), [#allocation2], %s705_s23 }
  0x14   : > { %v306_v0 = vld [vmem:[%s289_s26] sm:$0xf] (%p38_p5)  ;;  %v308_v1 = vld [vmem:[%s289_s26 + $0x8] sm:$0xf] (%p38_p5) }
  0x15   : > { %307 = vst [vmem:[%s287_s27] sm:$0xf] (%p38_p5), %v306_v0 }
  0x16   : > { %309 = vst [vmem:[%s287_s27 + $0x4] sm:$0xf] %v308_v1 }
  0x17 PF: > { %p707_p10 = scmp.ge.s32.totalorder %s861_s12, 1  ;;  %p336_p11 = scmp.lt.s32.totalorder %s861_s12, 3 }
  0x19   : > { %p337_p12 = pnand %p707_p10, %p336_p11 }
  0x1a   : > { %s343_s14 = sand.u32 (!%p337_p12), 1, %s853_s10   ;;  %s746_s29 = sshll.u32 (!%p337_p12), %s701_s13, 3 }
  0x1b   : > { %340 = sbr.rel (%p337_p12) target bundleno = 673 (0x2a1), region = 93  ;;  %s976_s16 = sshll.u32 (!%p337_p12), %s343_s14, 3 }
  0x1c   : > { %s345_s22 = scalar_lea.vmem (!%p337_p12), [#allocation2], %s976_s16  ;;  %s377_s23 = scalar_lea.vmem (!%p337_p12), [#allocation3], %s976_s16 }
  0x1d   : > { %s634_s24 = sshll.u32 (!%p337_p12), %s377_s23, 4  ;;  %s622_s26 = scalar_lea.sflag (!%p337_p12), [#allocation4], %s343_s14  ;;  %s635_s24 = int_to_ptr.vmem [resolvable:$true] %s634_s24 }
  0x1e   : > { %s819_s16 = scalar_lea.hbm (!%p337_p12), %s1086_s9, 16 }
  0x20   : > { %v387_v2 = vld [vmem:[%s1079_s2 + $0x10] sm:$0xff]  ;;  %v863_v3 = vmov 0   ;;  %v385_v4 = vld [vmem:[%s1079_s2] sm:$0xff]  ;;  %vm425_vm0 = vcmask 130048   ;;  %v388_v7 = vld [vmem:[%s1079_s2 + $0x18] sm:$0xff]  ;;  %vm495_vm1 = vcmask 261120  }
  0x21   : > { %796 = vset.pattern.permute.xlu0 %v863_v3  ;;  %797 = vset.pattern.permute.xlu1 %v863_v3  ;;  %v749_v5 = vld [vmem:[%s345_s22] sm:$0xff]  ;;  %v534_v12 = vld [vmem:[%s1083_s6 + $0x18] sm:$0xff]  ;;  %v463_v20 = vld [vmem:[%s1081_s4 + $0x10] sm:$0xff]  ;;  %s632_s22 = scalar_lea.hbm %s1086_s9, %s746_s29 }
  0x22   : > { %401 = vperm.xlu0 %796, %v387_v2   ;;  %391 = vperm.xlu1 %797, %v385_v4   ;;  %v750_v6 = vld [vmem:[%s1078_s1] sm:$0xff]  ;;  %v386_v8 = vld [vmem:[%s1079_s2 + $0x8] sm:$0xff]  ;;  %v464_v30 = vld [vmem:[%s1081_s4 + $0x18] sm:$0xff]  ;;  %s636_s25 = sshll.u32 %s632_s22, 4  ;;  %s637_s25 = int_to_ptr.hbm [resolvable:$true] %s636_s25 }
  0x23   : > { %798 = vset.pattern.permute.xlu2 %v863_v3  ;;  %439 = vmatpush.bf16.msra.mxu0 %v749_v5  ;;  %v461_v9 = vld [vmem:[%s1081_s4] sm:$0xff]  ;;  %v462_v10 = vld [vmem:[%s1081_s4 + $0x8] sm:$0xff]  ;;  %v533_v36 = vld [vmem:[%s1083_s6 + $0x10] sm:$0xff]  ;;  %s813_s27 = sshra.s32 %s637_s25, 4  ;;  %s814_s27 = int_to_ptr.hbm [resolvable:$true] %s813_s27 }
  0x24   : > { %v751_v11 = vld [vmem:[%s1078_s1 + $0x8] sm:$0xff]  ;;  %v531_v13 = vld [vmem:[%s1083_s6] sm:$0xff]  ;;  %477 = vperm.xlu2 %798, %v463_v20   ;;  %s815_s13 = scalar_lea.hbm %s814_s27, 8  ;;  %p820_p2 = scmp.lt.s32.totalorder %s814_s27, %s1086_s9 }
  0x25   : > { %v597_v14 = vld [vmem:[%s1085_s8] sm:$0xff]  ;;  %v532_v37 = vld [vmem:[%s1083_s6 + $0x8] sm:$0xff]  ;;  %p816_p13 = scmp.ne.s32.totalorder %s814_s27, %s815_s13  ;;  %p821_p3 = scmp.lt.s32.totalorder %s819_s16, %s815_s13 }
  0x26   : > { %722 = vmatmul.msk.bf16.vlgmr.msra.gmra.mxu0 %vm425_vm0, %v750_v6  ;;  %v752_v35 = vld [vmem:[%s1080_s3] sm:$0xff]  ;;  %v753_v38 = vld [vmem:[%s1080_s3 + $0x8] sm:$0xff] }
  0x27   : > { %v754_v57 = vld [vmem:[%s1082_s5] sm:$0xff]  ;;  %v755_v58 = vld [vmem:[%s1082_s5 + $0x8] sm:$0xff]  ;;  %p817_p0 = pnand %p816_p13, %p952_p6  ;;  %p822_p4 = por %p821_p3, %p820_p2 }
  0x29   : > { %p818_p1 = pneg %p817_p0 }
  0x2a   : > { %406 = vperm.xlu0 %796, %v388_v7   ;;  %396 = vperm.xlu1 %797, %v386_v8  }
  0x2b   : > { %p823_p5 = pnand %p822_p4, %p818_p1 }
  0x2c   : > { %482 = vperm.xlu2 %798, %v464_v30  }
  0x32   : > { %467 = vperm.xlu0 %796, %v461_v9   ;;  %472 = vperm.xlu1 %797, %v462_v10  }
  0x34   : > { %547 = vperm.xlu2 %798, %v533_v36  }
  0x36   : > { %723 = vmatmul.msk.bf16.gmra.mxu0 %vm425_vm0, %v751_v11 }
  0x3a   : > { %552 = vperm.xlu0 %796, %v534_v12   ;;  %537 = vperm.xlu1 %797, %v531_v13   ;;  %v596_v13 = vld [vmem:[%s1084_s7] sm:$0xf] }
  0x3c   : > { %542 = vperm.xlu2 %798, %v532_v37  }
  0x42   : > { %600 = vperm.xlu0 %796, %v597_v14  }
  0x7e   : > { %v478_v41 = vpop.permute.xlu2 %477 }
  0x86   : > { %v483_v45 = vpop.permute.xlu2 %482 }
  0x8e   : > { %v548_v61 = vpop.permute.xlu2 %547 }
  0x94   : > { %v402_v17 = vpop.permute.xlu0 %401  ;;  %v392_v18 = vpop.permute.xlu1 %391 }
  0x96   : > { %v543_v1 = vpop.permute.xlu2 %542 }
  0x9c   : > { %v407_v21 = vpop.permute.xlu0 %406  ;;  %v397_v23 = vpop.permute.xlu1 %396 }
  0xa3   : > { %v441_v15 = vpop.f32.mrf.mxu0 }
  0xa4   : > { %v442_v27 = vadd.f32 %v441_v15, %v392_v18  ;;  %v473_v43 = vpop.permute.xlu1 %472  ;;  %v468_v49 = vpop.permute.xlu0 %467 }
  0xa6   : > { %v451_v33 = vmax.f32 %v442_v27, 0.0 }
  0xab   : > { %v443_v16 = vpop.f32.mrf.mxu0 }
  0xac   : > { %v444_v25 = vadd.f32 %v443_v16, %v397_v23  ;;  %v553_v63 = vpop.permute.xlu0 %552  ;;  %v538_v5 = vpop.permute.xlu1 %537 }
  0xae   : > { %v452_v31 = vmax.f32 %v444_v25, 0.0 }
  0xb0   : > { %v455_v34 = vpack.c.bf16 %v452_v31, %v451_v33 }
  0xb3   : > { %v446_v19 = vpop.f32.mrf.mxu0 }
  0xb4   : > { %v447_v22 = vadd.f32 %v446_v19, %v402_v17  ;;  %v601_v14 = vpop.permute.xlu0 %600 }
  0xb6   : > { %v453_v28 = vmax.f32 %v447_v22, 0.0 }
  0xbb   : > { %v448_v24 = vpop.f32.mrf.mxu0 }
  0xbc   : > { %v449_v26 = vadd.f32 %v448_v24, %v407_v21 }
  0xbe   : > { %v454_v29 = vmax.f32 %v449_v26, 0.0 }
  0xc0   : > { %v456_v32 = vpack.c.bf16 %v454_v29, %v453_v28 }
  0xc2   : > { %508 = vmatpush.bf16.msra.mxu1 %v456_v32 }
  0xc6   : > { %509 = vmatpush.bf16.msra.mxu1 %v455_v34 }
  0xc9   : > { %732 = vmatmul.msk.bf16.vlgmr.msra.gmra.mxu1 %vm495_vm1, %v752_v35 }
  0xd9   : > { %733 = vmatmul.msk.bf16.gmra.mxu1 %vm495_vm1, %v753_v38 }
 0x146   : > { %v511_v39 = vpop.f32.mrf.mxu1 }
 0x147   : > { %v512_v50 = vadd.f32 %v511_v39, %v468_v49 }
 0x149   : > { %v521_v55 = vmax.f32 %v512_v50, 0.0 }
 0x14e   : > { %v513_v40 = vpop.f32.mrf.mxu1 }
 0x14f   : > { %v514_v47 = vadd.f32 %v513_v40, %v473_v43 }
 0x151   : > { %v522_v53 = vmax.f32 %v514_v47, 0.0 }
 0x153   : > { %v525_v56 = vpack.c.bf16 %v522_v53, %v521_v55 }
 0x156   : > { %v516_v42 = vpop.f32.mrf.mxu1 }
 0x157   : > { %v517_v44 = vadd.f32 %v516_v42, %v478_v41 }
 0x159   : > { %v523_v51 = vmax.f32 %v517_v44, 0.0 }
 0x15e   : > { %v518_v46 = vpop.f32.mrf.mxu1 }
 0x15f   : > { %v519_v48 = vadd.f32 %v518_v46, %v483_v45 }
 0x161   : > { %v524_v52 = vmax.f32 %v519_v48, 0.0 }
 0x163   : > { %v526_v54 = vpack.c.bf16 %v524_v52, %v523_v51 }
 0x165   : > { %577 = vmatpush.bf16.msra.mxu2 %v526_v54 }
 0x169   : > { %578 = vmatpush.bf16.msra.mxu2 %v525_v56 }
 0x16c   : > { %742 = vmatmul.msk.bf16.vlgmr.msra.gmra.mxu2 %vm495_vm1, %v754_v57 }
 0x17c   : > { %743 = vmatmul.msk.bf16.gmra.mxu2 %vm495_vm1, %v755_v58 }
 0x1ef   : > { %v580_v59 = vpop.f32.mrf.mxu2 }
 0x1f0   : > { %v581_v6 = vadd.f32 %v580_v59, %v538_v5 }
 0x1f2   : > { %v590_v11 = vmax.f32 %v581_v6, 0.0 }
 0x1f7   : > { %v582_v60 = vpop.f32.mrf.mxu2 }
 0x1f8   : > { %v583_v3 = vadd.f32 %v582_v60, %v543_v1 }
 0x1fa   : > { %v591_v9 = vmax.f32 %v583_v3, 0.0 }
 0x1fc   : > { %v594_v12 = vpack.c.bf16 %v591_v9, %v590_v11 }
 0x1ff   : > { %v585_v62 = vpop.f32.mrf.mxu2 }
 0x200   : > { %v586_v0 = vadd.f32 %v585_v62, %v548_v61 }
 0x202   : > { %v592_v7 = vmax.f32 %v586_v0, 0.0 }
 0x207   : > { %v587_v2 = vpop.f32.mrf.mxu2 }
 0x208   : > { %v588_v4 = vadd.f32 %v587_v2, %v553_v63 }
 0x20a   : > { %v593_v8 = vmax.f32 %v588_v4, 0.0 }
 0x20c   : > { %v595_v10 = vpack.c.bf16 %v593_v8, %v592_v7 }
 0x20e   : > { %612 = vmatpush.bf16.msra.mxu3 %v595_v10 }
 0x212   : > { %613 = vmatpush.bf16.msra.mxu3 %v594_v12 }
 0x215   : > { %744 = vmatmul.msk.bf16.vlgmr.msra.gmra.mxu3 %vm495_vm1, %v596_v13 }
 0x298   : > { %v615_v15 = vpop.f32.mrf.mxu3 }
 0x299   : > { %v616_v16 = vadd.f32 %v615_v15, %v601_v14 }
 0x29b   : > { %v619_v17 = vand.u32 2147483647, %v616_v16 }
 0x29d   : > { %620 = vst [vmem:[%s377_s23] sm:$0xff] %v619_v17 }
 0x29e   : > { %826 = shalt.err (!%p823_p5)
}
 0x29f   : > { %756 = dma.vmem_to_hbm [thread:$0]  (%p952_p6), %s635_s24, 128, %s637_s25, %s622_s26  }
 0x2a0   : > { %v617_v18 = vpop.f32.mrf.mxu3 }
 0x2a1 PF: > { %s648_s14 = sand.u32 1, %s849_s30   ;;  %p759_p7 = pnand %p704_p9, %p956_p8 }
 0x2a2   : > { %s649_s22 = scalar_lea.sflag [#allocation4], %s648_s14 }
 0x2a3   : > { %p760_p10 = pneg %p759_p7 }
 0x2a5   : > { %844 = dma.done.wait (%p760_p10), %s649_s22, 128  }
 0x2a6   : > { %846 = vsyncadd (%p760_p10), %s649_s22, 4294967168  ;;  %p19_p11 = scmp.ge.s32.totalorder %s937_s15, 4   ;;  %s1089_s30 = smov %s853_s10 }
 0x2a7   : > { %s1090_s10 = smov %s857_s11  ;;  %s1091_s11 = smov %s950_s18 }
 0x2a8   : > { %s1092_s12 = smov %s937_s15  ;;  %21 = sbr.rel (!%p19_p11) target bundleno = 3 (0x3), region = 137 }
 0x2ad   :  { %655 = vsyncpa [#allocation4], 1 }
 0x2ae   :  { %657 = vsyncpa [#allocation4 + $0x1], 1 }

</bundles_post_ra>
